<compile_context>
chip_gen: v6e
topology: v6e:2x2x1
jax: 0.10.0
libtpu: 0.0.40
codegen_flags: <defaults>
</compile_context>

<pallas_src>
import jax
import jax.numpy as jnp
from jax.experimental import pallas as pl
from jax.experimental.pallas import tpu as pltpu


def _elementwise_kernel(x_ref, arith_ref, mask_ref):
    x = x_ref[...]
    # Four f32 arithmetic results -> one stacked (4, rb, cols) output slab.
    arith_ref[0] = x + 5.0
    arith_ref[1] = x - 3.0
    arith_ref[2] = x * 2.0
    arith_ref[3] = x * 0.25          # x / 4 as reciprocal multiply (exact)
    # Three comparison masks -> one stacked (3, rb, cols) int8 output slab.
    # (exact float == 0.0 match is intentional, mirroring torch semantics)
    mask_ref[0] = (x > 2.0).astype(jnp.int8)
    mask_ref[1] = (x < 1.0).astype(jnp.int8)
    mask_ref[2] = (x == 0.0).astype(jnp.int8)


def _pick_row_block(rows: int) -> int:
    # ~512-row tiles are near the HBM roofline on v6e; fall back to the full
    # row extent when rows are small or not evenly divisible (keeps the
    # (8,128) block-divisibility rule satisfied in every case).
    for cand in (512, 256, 128, 64, 32, 16, 8):
        if rows > cand and rows % cand == 0:
            return cand
    return rows


def pt_module_forward(x):
    """Pallas implementation of PtModule.forward for a float32 NCHW tensor."""
    orig_shape = x.shape
    rows = orig_shape[0] * orig_shape[1]          # N*C
    cols = orig_shape[2] * orig_shape[3]          # H*W (lane-dense: 256)
    x2d = x.reshape(rows, cols)

    row_block = _pick_row_block(rows)
    grid = (rows // row_block,)

    out_shapes = (
        jax.ShapeDtypeStruct((4, rows, cols), x.dtype),   # add/sub/mul/div
        jax.ShapeDtypeStruct((3, rows, cols), jnp.int8),  # gt/lt/eq masks
    )

    in_spec = pl.BlockSpec((row_block, cols), lambda i: (i, 0))
    arith_spec = pl.BlockSpec((4, row_block, cols), lambda i: (0, i, 0))
    mask_spec = pl.BlockSpec((3, row_block, cols), lambda i: (0, i, 0))

    arith, masks = pl.pallas_call(
        _elementwise_kernel,
        out_shape=out_shapes,
        grid=grid,
        in_specs=[in_spec],
        out_specs=(arith_spec, mask_spec),
        compiler_params=pltpu.CompilerParams(
            dimension_semantics=("parallel",)),
    )(x2d)

    # Single cast over the stacked mask slab (one tiny XLA op instead of 3).
    masks_b = masks.astype(jnp.bool_)
    r = lambda a: a.reshape(orig_shape)
    return (
        r(arith[0]),     # add
        r(arith[1]),     # sub
        r(arith[2]),     # mul
        r(arith[3]),     # div
        r(masks_b[0]),   # gt
        r(masks_b[1]),   # lt
        r(masks_b[2]),   # eq
    )


if __name__ == "__main__":
    key = jax.random.PRNGKey(0)
    # Small NCHW input consistent with the module's elementwise forward.
    x = jax.random.normal(key, (2, 4, 16, 16), dtype=jnp.float32) * 3.0
    # Force some exact zeros so the eq_result mask is exercised.
    x = x.at[0, 0, 0, :4].set(0.0)

    outs = pt_module_forward(x)
    outs = jax.block_until_ready(outs)

    # Correctness check against plain JAX reference (exact equality; x*0.25 is
    # bit-identical to x/4 for float32 since 4 is a power of two).
    refs = (x + 5, x - 3, x * 2, x / 4, x > 2, x < 1, x == 0)
    for got, ref in zip(outs, refs):
        assert got.shape == ref.shape and got.dtype == ref.dtype
        assert bool(jnp.all(got == ref))

    print("KERNEL_OK")
</pallas_src>

<mosaic_0001>
module attributes {stable_mosaic.version = 11 : i64} {
  func.func @_elementwise_kernel(%arg0: i32, %arg1: memref<8x256xf32, #tpu.memory_space<vmem>>, %arg2: memref<4x8x256xf32, #tpu.memory_space<vmem>>, %arg3: memref<3x8x256xi8, #tpu.memory_space<vmem>>) attributes {dimension_semantics = [#tpu.dimension_semantics<parallel>], iteration_bounds = array<i64: 1>, scalar_prefetch = 0 : i64, scratch_operands = 0 : i64, tpu.core_type = #tpu.core_type<tc>, window_params = [{transform_indices = @transform_0, window_bounds = array<i64: 8, 256>}, {transform_indices = @transform_1, window_bounds = array<i64: 4, 8, 256>}, {transform_indices = @transform_2, window_bounds = array<i64: 3, 8, 256>}]} {
    %c0 = arith.constant 0 : index
    %c0_0 = arith.constant 0 : index
    %0 = vector.load %arg1[%c0, %c0_0] : memref<8x256xf32, #tpu.memory_space<vmem>>, vector<8x256xf32>
    %cst = arith.constant 5.000000e+00 : f32
    %1 = vector.broadcast %cst : f32 to vector<8x256xf32>
    %2 = arith.addf %0, %1 : vector<8x256xf32>
    %c0_1 = arith.constant 0 : index
    %c0_2 = arith.constant 0 : index
    %c0_3 = arith.constant 0 : index
    %3 = vector.load %arg2[%c0_1, %c0_2, %c0_3] : memref<4x8x256xf32, #tpu.memory_space<vmem>>, vector<1x8x256xf32>
    %4 = vector.shape_cast %3 : vector<1x8x256xf32> to vector<8x256xf32>
    %5 = vector.shape_cast %2 : vector<8x256xf32> to vector<1x8x256xf32>
    tpu.vector_store %arg2[%c0_1, %c0_2, %c0_3], %5 {strides = array<i32>} : memref<4x8x256xf32, #tpu.memory_space<vmem>>, vector<1x8x256xf32>,
    %cst_4 = arith.constant 3.000000e+00 : f32
    %6 = vector.broadcast %cst_4 : f32 to vector<8x256xf32>
    %7 = arith.subf %0, %6 : vector<8x256xf32>
    %c1 = arith.constant 1 : index
    %c0_5 = arith.constant 0 : index
    %c0_6 = arith.constant 0 : index
    %8 = vector.load %arg2[%c1, %c0_5, %c0_6] : memref<4x8x256xf32, #tpu.memory_space<vmem>>, vector<1x8x256xf32>
    %9 = vector.shape_cast %8 : vector<1x8x256xf32> to vector<8x256xf32>
    %10 = vector.shape_cast %7 : vector<8x256xf32> to vector<1x8x256xf32>
    tpu.vector_store %arg2[%c1, %c0_5, %c0_6], %10 {strides = array<i32>} : memref<4x8x256xf32, #tpu.memory_space<vmem>>, vector<1x8x256xf32>,
    %cst_7 = arith.constant 2.000000e+00 : f32
    %11 = vector.broadcast %cst_7 : f32 to vector<8x256xf32>
    %12 = arith.mulf %0, %11 : vector<8x256xf32>
    %c2 = arith.constant 2 : index
    %c0_8 = arith.constant 0 : index
    %c0_9 = arith.constant 0 : index
    %13 = vector.load %arg2[%c2, %c0_8, %c0_9] : memref<4x8x256xf32, #tpu.memory_space<vmem>>, vector<1x8x256xf32>
    %14 = vector.shape_cast %13 : vector<1x8x256xf32> to vector<8x256xf32>
    %15 = vector.shape_cast %12 : vector<8x256xf32> to vector<1x8x256xf32>
    tpu.vector_store %arg2[%c2, %c0_8, %c0_9], %15 {strides = array<i32>} : memref<4x8x256xf32, #tpu.memory_space<vmem>>, vector<1x8x256xf32>,
    %cst_10 = arith.constant 2.500000e-01 : f32
    %16 = vector.broadcast %cst_10 : f32 to vector<8x256xf32>
    %17 = arith.mulf %0, %16 : vector<8x256xf32>
    %c3 = arith.constant 3 : index
    %c0_11 = arith.constant 0 : index
    %c0_12 = arith.constant 0 : index
    %18 = vector.load %arg2[%c3, %c0_11, %c0_12] : memref<4x8x256xf32, #tpu.memory_space<vmem>>, vector<1x8x256xf32>
    %19 = vector.shape_cast %18 : vector<1x8x256xf32> to vector<8x256xf32>
    %20 = vector.shape_cast %17 : vector<8x256xf32> to vector<1x8x256xf32>
    tpu.vector_store %arg2[%c3, %c0_11, %c0_12], %20 {strides = array<i32>} : memref<4x8x256xf32, #tpu.memory_space<vmem>>, vector<1x8x256xf32>,
    %cst_13 = arith.constant 2.000000e+00 : f32
    %21 = vector.broadcast %cst_13 : f32 to vector<8x256xf32>
    %22 = arith.cmpf ogt, %0, %21 : vector<8x256xf32>
    %23 = arith.extui %22 : vector<8x256xi1> to vector<8x256xi8>
    %c0_14 = arith.constant 0 : index
    %c0_15 = arith.constant 0 : index
    %c0_16 = arith.constant 0 : index
    %24 = vector.load %arg3[%c0_14, %c0_15, %c0_16] : memref<3x8x256xi8, #tpu.memory_space<vmem>>, vector<1x8x256xi8>
    %25 = vector.shape_cast %24 : vector<1x8x256xi8> to vector<8x256xi8>
    %26 = vector.shape_cast %23 : vector<8x256xi8> to vector<1x8x256xi8>
    tpu.vector_store %arg3[%c0_14, %c0_15, %c0_16], %26 {strides = array<i32>} : memref<3x8x256xi8, #tpu.memory_space<vmem>>, vector<1x8x256xi8>,
    %cst_17 = arith.constant 1.000000e+00 : f32
    %27 = vector.broadcast %cst_17 : f32 to vector<8x256xf32>
    %28 = arith.cmpf olt, %0, %27 : vector<8x256xf32>
    %29 = arith.extui %28 : vector<8x256xi1> to vector<8x256xi8>
    %c1_18 = arith.constant 1 : index
    %c0_19 = arith.constant 0 : index
    %c0_20 = arith.constant 0 : index
    %30 = vector.load %arg3[%c1_18, %c0_19, %c0_20] : memref<3x8x256xi8, #tpu.memory_space<vmem>>, vector<1x8x256xi8>
    %31 = vector.shape_cast %30 : vector<1x8x256xi8> to vector<8x256xi8>
    %32 = vector.shape_cast %29 : vector<8x256xi8> to vector<1x8x256xi8>
    tpu.vector_store %arg3[%c1_18, %c0_19, %c0_20], %32 {strides = array<i32>} : memref<3x8x256xi8, #tpu.memory_space<vmem>>, vector<1x8x256xi8>,
    %cst_21 = arith.constant 0.000000e+00 : f32
    %33 = vector.broadcast %cst_21 : f32 to vector<8x256xf32>
    %34 = arith.cmpf oeq, %0, %33 : vector<8x256xf32>
    %35 = arith.extui %34 : vector<8x256xi1> to vector<8x256xi8>
    %c2_22 = arith.constant 2 : index
    %c0_23 = arith.constant 0 : index
    %c0_24 = arith.constant 0 : index
    %36 = vector.load %arg3[%c2_22, %c0_23, %c0_24] : memref<3x8x256xi8, #tpu.memory_space<vmem>>, vector<1x8x256xi8>
    %37 = vector.shape_cast %36 : vector<1x8x256xi8> to vector<8x256xi8>
    %38 = vector.shape_cast %35 : vector<8x256xi8> to vector<1x8x256xi8>
    tpu.vector_store %arg3[%c2_22, %c0_23, %c0_24], %38 {strides = array<i32>} : memref<3x8x256xi8, #tpu.memory_space<vmem>>, vector<1x8x256xi8>,
    return
  }
  func.func @transform_0(%arg0: i32) -> (i32, i32) {
    %c0_i32 = arith.constant 0 : i32
    %c0_i32_0 = arith.constant 0 : i32
    return %arg0, %c0_i32 : i32, i32
  }
  func.func @transform_1(%arg0: i32) -> (i32, i32, i32) {
    %c0_i32 = arith.constant 0 : i32
    %c0_i32_0 = arith.constant 0 : i32
    %c0_i32_1 = arith.constant 0 : i32
    return %c0_i32, %arg0, %c0_i32_0 : i32, i32, i32
  }
  func.func @transform_2(%arg0: i32) -> (i32, i32, i32) {
    %c0_i32 = arith.constant 0 : i32
    %c0_i32_0 = arith.constant 0 : i32
    %c0_i32_1 = arith.constant 0 : i32
    return %c0_i32, %arg0, %c0_i32_0 : i32, i32, i32
  }
}

</mosaic_0001>

<bundles_post_ra>
// kernel: tpu_custom_call.1
= control target key start
LH: loop header
LB: loop body
LE: loop exit
PB: predicated region body
PF: predicated region fallthrough
CT: control target
= control target key end

     0   :  { %8 = vsyncpa [#allocation3], 0  ;;  %s240_s0 = inlined_call_operand.hbm [shape: f32[8,256], index: 0, kind: input, shape index: {}]   ;;  %s241_s1 = inlined_call_operand.hbm [shape: f32[4,8,256], index: 1, kind: output, shape index: {0}]   ;;  %s242_s2 = inlined_call_operand.hbm [shape: s8[3,8,256], index: 2, kind: output, shape index: {1}]  }
   0x1   :  { %9 = vsyncpa [#allocation4], 0 }
   0x2   :  { %10 = vsyncpa [#allocation7], 0  ;;  %s197_s9 = smov [#allocation2]  }
   0x3   :  { %s17_s10 = sshll.u32 %s197_s9, 4  ;;  %s18_s10 = int_to_ptr.vmem [resolvable:$true] %s17_s10 }
   0x4   :  { %s139_s11 = scalar_lea.vmem %s18_s10, 256  ;;  %p144_p1 = scmp.lt.s32.totalorder %s18_s10, %s18_s10 }
   0x5   :  { %p140_p0 = scmp.ne.s32.totalorder %s18_s10, %s139_s11  ;;  %p145_p2 = scmp.lt.s32.totalorder %s139_s11, %s139_s11 }
   0x7   :  { %p146_p3 = por %p145_p2, %p144_p1 }
   0x9   :  { %p147_p4 = pnand %p146_p3, %p140_p0 }
   0xb   :  { %150 = shalt.err (!%p147_p4)
}
   0xc   :  { %20 = dma.hbm_to_vmem [thread:$0]  %s240_s0, 256, %s18_s10, [#allocation3]  }
   0xd   :  { %191 = dma.done.wait [#allocation3], 256  }
   0xe   :  { %192 = vsyncadd [#allocation3], 4294967040  ;;  %s198_s14 = smov [#allocation5]   ;;  %v26_v0 = vld [vmem:[#allocation2] sm:$0xff]  ;;  %v27_v1 = vld [vmem:[#allocation2 + $0x8] sm:$0xff] }
   0xf   :  { %s93_s15 = sshll.u32 %s198_s14, 4  ;;  %v28_v2 = vadd.f32 5.0, %v26_v0  ;;  %v29_v3 = vadd.f32 5.0, %v27_v1  ;;  %v121_v4 = vadd.f32 -3.0, %v26_v0  ;;  %v122_v5 = vadd.f32 -3.0, %v27_v1  ;;  %s94_s15 = int_to_ptr.vmem [resolvable:$true] %s93_s15 }
  0x10   :  { %v37_v6 = vmul.f32 2.0, %v26_v0  ;;  %v38_v7 = vmul.f32 2.0, %v27_v1  ;;  %v42_v8 = vmul.f32 0.25, %v26_v0  ;;  %v43_v9 = vmul.f32 0.25, %v27_v1  ;;  %s151_s0 = scalar_lea.vmem %s94_s15, 1024  ;;  %p156_p6 = scmp.lt.s32.totalorder %s94_s15, %s94_s15 }
  0x11   :  { %30 = vst [vmem:[#allocation5] sm:$0xff] %v28_v2  ;;  %31 = vst [vmem:[#allocation5 + $0x8] sm:$0xff] %v29_v3  ;;  %vm47_vm0 = vcmp.gt.f32.partialorder %v26_v0, 2.0  ;;  %vm48_vm1 = vcmp.gt.f32.partialorder %v27_v1, 2.0  ;;  %vm60_vm4 = vcmp.lt.f32.partialorder %v26_v0, 1.0  ;;  %p152_p5 = scmp.ne.s32.totalorder %s94_s15, %s151_s0  ;;  %p157_p7 = scmp.lt.s32.totalorder %s151_s0, %s151_s0 }
  0x12   :  { %35 = vst [vmem:[#allocation5 + $0x10] sm:$0xff] %v121_v4  ;;  %36 = vst [vmem:[#allocation5 + $0x18] sm:$0xff] %v122_v5 }
  0x13   :  { %40 = vst [vmem:[#allocation5 + $0x20] sm:$0xff] %v37_v6  ;;  %41 = vst [vmem:[#allocation5 + $0x28] sm:$0xff] %v38_v7  ;;  %p158_p8 = por %p157_p7, %p156_p6 }
  0x14   :  { %45 = vst [vmem:[#allocation5 + $0x30] sm:$0xff] %v42_v8  ;;  %46 = vst [vmem:[#allocation5 + $0x38] sm:$0xff] %v43_v9 }
  0x15   :  { %vm223_vm2 = vmpackc.low %vm47_vm0, %vm47_vm0  ;;  %p159_p9 = pnand %p158_p8, %p152_p5 }
  0x16   :  { %vm50_vm3 = vmpackc.even %vm223_vm2, %vm223_vm2 }
  0x17   :  { %162 = shalt.err (!%p159_p9)
}
  0x18   :  { %s199_s16 = smov 256   ;;  %s200_s17 = smov 16   ;;  %vm51_vm5 = vmpackc.low %vm48_vm1, %vm48_vm1  ;;  %v201_v11 = vmov 0   ;;  %vm61_vm7 = vcmp.lt.f32.partialorder %v27_v1, 1.0  ;;  %vm74_vm10 = vcmp.eq.f32.partialorder %v26_v0, 0.0  ;;  %vm75_vm13 = vcmp.eq.f32.partialorder %v27_v1, 0.0 }
  0x19   :  { %99 = dma.vmem_to_hbm [thread:$0]  %s94_s15, 1024, %s241_s1, [#allocation4], %s199_s16, %s199_s16, %s200_s17   ;;  %v53_v12 = vsel %vm50_vm3, 16843009, %v201_v11  ;;  %vm52_vm6 = vmpackc.even %vm51_vm5, %vm51_vm5 }
  0x1a   :  { %v55_v13 = vunpack.c.0.s8 %v53_v12  ;;  %v54_v14 = vsel %vm52_vm6, 16843009, %v201_v11  ;;  %vm62_vm8 = vmpackc.low %vm60_vm4, %vm60_vm4  ;;  %s202_s1 = smov [#allocation6]  }
  0x1b   :  { %v56_v15 = vunpack.c.0.s8 %v54_v14  ;;  %vm63_vm9 = vmpackc.even %vm62_vm8, %vm62_vm8  ;;  %s105_s20 = sshll.u32 %s202_s1, 4  ;;  %s106_s20 = int_to_ptr.vmem [resolvable:$true] %s105_s20 }
  0x1c   :  { %vm64_vm11 = vmpackc.low %vm61_vm7, %vm61_vm7  ;;  %v66_v16 = vsel %vm63_vm9, 16843009, %v201_v11  ;;  %s171_s21 = scalar_lea.vmem %s106_s20, 192  ;;  %p176_p11 = scmp.lt.s32.totalorder %s106_s20, %s106_s20 }
  0x1d   :  { %v57_v17 = vpack.c.b16 %v56_v15, %v55_v13  ;;  %vm65_vm12 = vmpackc.even %vm64_vm11, %vm64_vm11  ;;  %v68_v18 = vunpack.c.0.s8 %v66_v16  ;;  %p172_p10 = scmp.ne.s32.totalorder %s106_s20, %s171_s21  ;;  %p177_p12 = scmp.lt.s32.totalorder %s171_s21, %s171_s21 }
  0x1e   :  { %v67_v19 = vsel %vm65_vm12, 16843009, %v201_v11  ;;  %vm76_vm14 = vmpackc.low %vm74_vm10, %vm74_vm10 }
  0x1f   :  { %v58_v20 = vpack.c.b8 %v57_v17, %v57_v17  ;;  %v69_v21 = vunpack.c.0.s8 %v67_v19  ;;  %vm77_vm15 = vmpackc.even %vm76_vm14, %vm76_vm14  ;;  %p178_p13 = por %p177_p12, %p176_p11 }
  0x20   :  { %vm78_vm0 = vmpackc.low %vm75_vm13, %vm75_vm13  ;;  %v80_v22 = vsel %vm77_vm15, 16843009, %v201_v11 }
  0x21   :  { %59 = vst [vmem:[#allocation6] sm:$0xf] %v58_v20  ;;  %v70_v23 = vpack.c.b16 %v69_v21, %v68_v18  ;;  %vm79_vm1 = vmpackc.even %vm78_vm0, %vm78_vm0  ;;  %v82_v24 = vunpack.c.0.s8 %v80_v22  ;;  %p179_p0 = pnand %p178_p13, %p172_p10 }
  0x22   :  { %v81_v25 = vsel %vm79_vm1, 16843009, %v201_v11 }
  0x23   :  { %v71_v26 = vpack.c.b8 %v70_v23, %v70_v23  ;;  %v83_v27 = vunpack.c.0.s8 %v81_v25 }
  0x25   :  { %73 = vst [vmem:[#allocation6 + $0x4] sm:$0xf] %v71_v26  ;;  %v84_v28 = vpack.c.b16 %v83_v27, %v82_v24 }
  0x27   :  { %v85_v29 = vpack.c.b8 %v84_v28, %v84_v28 }
  0x29   :  { %87 = vst [vmem:[#allocation6 + $0x8] sm:$0xf] %v85_v29 }
  0x2a   :  { %182 = shalt.err (!%p179_p0)
}
  0x2b   :  { %s203_s22 = smov 64   ;;  %s204_s23 = smov 4  }
  0x2c   :  { %111 = dma.vmem_to_hbm [thread:$0]  %s106_s20, 192, %s242_s2, [#allocation7], %s203_s22, %s203_s22, %s204_s23  }
  0x2d   :  { %193 = dma.done.wait [#allocation4], 1024  }
  0x2e   :  { %194 = vsyncadd [#allocation4], 4294966272 }
  0x2f   :  { %195 = dma.done.wait [#allocation7], 192  }
  0x30   :  { %196 = vsyncadd [#allocation7], 4294967104 }
  0x31   :  { %118 = vsyncpa [#allocation3], 1 }
  0x32   :  { %119 = vsyncpa [#allocation4], 1 }
  0x33   :  { %120 = vsyncpa [#allocation7], 1 }

</bundles_post_ra>
